<compile_context>
chip_gen: v7x
topology: tpu7x:2x2x1
jax: 0.10.0
libtpu: 0.0.40
codegen_flags: <defaults>
</compile_context>

<pallas_src>
import jax
import jax.numpy as jnp
from jax.experimental import pallas as pl
from jax.experimental.pallas import tpu as pltpu

HIDDEN = 128
IN_DIM = 3


def actor_fwd_kernel(x_ref, w1_ref, b1_ref, w2_ref, sc_ref, o_ref):
    # x_ref:  (3, tm)        batch in lanes
    # w1_ref: (128, 3)       PyTorch (out, in) layout, VMEM-resident
    # b1_ref: (128, 1)       hidden bias as a column
    # w2_ref: (128, 1)       second-layer weights as a column
    # sc_ref: (3,)  SMEM     [b2, out_scale, out_shift]
    # o_ref:  (1, tm)        lane-dense output row
    x = x_ref[...]
    w1 = w1_ref[...]

    # ---- Layer 1: h[i, j] = ReLU(b1[i] + sum_k w1[i,k] * x[k,j]) ----------
    # K=3 contraction as 3 VPU outer-product FMAs (MXU would waste 125/128).
    h = b1_ref[...]                                   # (128,1) -> lane bcast
    h = h + w1[:, 0:1] * x[0:1, :]                    # (128,1)*(1,tm)->(128,tm)
    h = h + w1[:, 1:2] * x[1:2, :]
    h = h + w1[:, 2:3] * x[2:3, :]
    h = jnp.maximum(h, 0.0)

    # ---- Layer 2: y[j] = sum_i w2[i] * h[i,j] + b2 -------------------------
    # Sublane reduce: mostly VALU vreg adds + one 8-sublane XLU reduce.
    y = jnp.sum(h * w2_ref[...], axis=0, keepdims=True) + sc_ref[0]   # (1, tm)

    # ---- tanh (EUP) + optional fused affine (transform_action) -------------
    act = jnp.tanh(y)
    o_ref[...] = (act * sc_ref[1] + sc_ref[2]).astype(o_ref.dtype)


def _round_up(n, m):
    return ((n + m - 1) // m) * m


def actor_forward(x, w1, b1, w2, b2, *, block_cols=2048, min_grid=2,
                  out_scale=1.0, out_shift=0.0):
    """x: (B, 3) f32 -> (B, 1) f32.

    Parameters in natural PyTorch layouts:
      w1: (128, 3), b1: (128,), w2: (1, 128), b2: (1,).
    out_scale/out_shift optionally fuse `transform_action` (defaults keep
    exact forward() semantics: tanh only).
    """
    B = x.shape[0]

    # Lane-dense batch tile: multiple of 128 lanes.  Aim for >= min_grid grid
    # steps (lights up both TensorCores on v7x) but never exceed block_cols;
    # tiny batches collapse to a single 128-lane block.
    lane_b = _round_up(max(B, 1), 128)
    tm = min(_round_up(block_cols, 128),
             max(128, _round_up(pl.cdiv(lane_b, max(min_grid, 1)), 128)))
    Bp = _round_up(lane_b, tm)            # pad so every block is full
    grid = (Bp // tm,)

    # Layout plumbing in the wrapper (trivially cheap at these sizes).
    x_t = jnp.pad(x.T.astype(jnp.float32), ((0, 0), (0, Bp - B)))   # (3, Bp)
    b1_col = jnp.reshape(b1.astype(jnp.float32), (HIDDEN, 1))
    w2_col = jnp.reshape(w2.astype(jnp.float32), (HIDDEN, 1))
    scalars = jnp.concatenate([
        jnp.reshape(jnp.asarray(b2, jnp.float32), (1,)),
        jnp.array([out_scale, out_shift], jnp.float32),
    ])                                                              # (3,)

    out_row = pl.pallas_call(
        actor_fwd_kernel,
        out_shape=jax.ShapeDtypeStruct((1, Bp), jnp.float32),
        grid_spec=pltpu.PrefetchScalarGridSpec(
            num_scalar_prefetch=0,
            grid=grid,
            in_specs=[
                pl.BlockSpec((IN_DIM, tm), lambda i: (0, i)),      # x: tiled (lanes)
                pl.BlockSpec((HIDDEN, IN_DIM), lambda i: (0, 0)),  # w1: resident
                pl.BlockSpec((HIDDEN, 1), lambda i: (0, 0)),       # b1 col: resident
                pl.BlockSpec((HIDDEN, 1), lambda i: (0, 0)),       # w2 col: resident
                pl.BlockSpec(memory_space=pltpu.MemorySpace.SMEM), # [b2, scale, shift]
            ],
            out_specs=pl.BlockSpec((1, tm), lambda i: (0, i)),     # lane-dense row
        ),
        compiler_params=pltpu.CompilerParams(
            dimension_semantics=("parallel",),   # shards batch across TCs on v7x
        ),
    )(x_t, w1.astype(jnp.float32), b1_col, w2_col, scalars)

    return out_row[0, :B].reshape(B, 1)


def init_params(key):
    """Deterministic init mimicking nn.Linear defaults, PyTorch (out,in) layouts."""
    k1, k2, k3, k4 = jax.random.split(key, 4)
    bound1 = 1.0 / jnp.sqrt(float(IN_DIM))
    bound2 = 1.0 / jnp.sqrt(float(HIDDEN))
    w1 = jax.random.uniform(k1, (HIDDEN, IN_DIM), jnp.float32, -bound1, bound1)
    b1 = jax.random.uniform(k2, (HIDDEN,), jnp.float32, -bound1, bound1)
    w2 = jax.random.uniform(k3, (1, HIDDEN), jnp.float32, -bound2, bound2)
    b2 = jax.random.uniform(k4, (1,), jnp.float32, -bound2, bound2)
    return w1, b1, w2, b2


def actor_forward_ref(x, w1, b1, w2, b2):
    h = jnp.maximum(x @ w1.T + b1, 0.0)
    return jnp.tanh(h @ w2.T + b2)


if __name__ == "__main__":
    key = jax.random.PRNGKey(0)
    kx, kp, kx2 = jax.random.split(key, 3)
    w1, b1, w2, b2 = init_params(kp)

    # Small RL-style batch (Pendulum observation dim = 3) -> single 128-lane block.
    B = 8
    x = jax.random.normal(kx, (B, IN_DIM), jnp.float32)
    out = jax.block_until_ready(actor_forward(x, w1, b1, w2, b2))
    ref = actor_forward_ref(x, w1, b1, w2, b2)
    assert out.shape == (B, 1)
    assert jnp.allclose(out, ref, atol=1e-5, rtol=1e-5)
    assert bool(jnp.all(jnp.abs(out) <= 1.0))

    # Larger batch: exercises >=2 grid steps (v7x megacore), lane padding,
    # and the lane-dense output writeback.
    B2 = 1000
    x2 = jax.random.normal(kx2, (B2, IN_DIM), jnp.float32)
    out2 = jax.block_until_ready(actor_forward(x2, w1, b1, w2, b2, block_cols=512))
    ref2 = actor_forward_ref(x2, w1, b1, w2, b2)
    assert out2.shape == (B2, 1)
    assert jnp.allclose(out2, ref2, atol=1e-5, rtol=1e-5)

    # Fused transform_action path: act * (max-min)/2 + (max+min)/2 with
    # min=-2, max=2  ->  scale=2, shift=0  (forward semantics unchanged by default).
    out3 = jax.block_until_ready(
        actor_forward(x2, w1, b1, w2, b2, out_scale=2.0, out_shift=0.0))
    assert jnp.allclose(out3, 2.0 * ref2, atol=1e-5, rtol=1e-5)

    print("KERNEL_OK")
</pallas_src>

<mosaic_0001>
module attributes {stable_mosaic.version = 11 : i64} {
  func.func @actor_fwd_kernel(%arg0: i32, %arg1: memref<3x128xf32, #tpu.memory_space<vmem>>, %arg2: memref<128x3xf32, #tpu.memory_space<vmem>>, %arg3: memref<128x1xf32, #tpu.memory_space<vmem>>, %arg4: memref<128x1xf32, #tpu.memory_space<vmem>>, %arg5: memref<3xf32, #tpu.memory_space<smem>>, %arg6: memref<1x128xf32, #tpu.memory_space<vmem>>) attributes {dimension_semantics = [#tpu.dimension_semantics<parallel>], iteration_bounds = array<i64: 1>, scalar_prefetch = 0 : i64, scratch_operands = 0 : i64, tpu.core_type = #tpu.core_type<tc>, window_params = [{transform_indices = @transform_0, window_bounds = array<i64: 3, 128>}, {pipeline_mode = #tpu.pipeline_mode<synchronous>, transform_indices = @transform_1, window_bounds = array<i64: 128, 3>}, {pipeline_mode = #tpu.pipeline_mode<synchronous>, transform_indices = @transform_2, window_bounds = array<i64: 128, 1>}, {pipeline_mode = #tpu.pipeline_mode<synchronous>, transform_indices = @transform_3, window_bounds = array<i64: 128, 1>}, {transform_indices = @transform_4, window_bounds = array<i64: 3>}, {transform_indices = @transform_5, window_bounds = array<i64: 1, 128>}]} {
    %c0 = arith.constant 0 : index
    %c0_0 = arith.constant 0 : index
    %0 = vector.load %arg1[%c0, %c0_0] : memref<3x128xf32, #tpu.memory_space<vmem>>, vector<3x128xf32>
    %c0_1 = arith.constant 0 : index
    %c0_2 = arith.constant 0 : index
    %1 = vector.load %arg2[%c0_1, %c0_2] : memref<128x3xf32, #tpu.memory_space<vmem>>, vector<128x3xf32>
    %c0_3 = arith.constant 0 : index
    %c0_4 = arith.constant 0 : index
    %2 = vector.load %arg3[%c0_3, %c0_4] : memref<128x1xf32, #tpu.memory_space<vmem>>, vector<128x1xf32>
    %3 = vector.extract_strided_slice %1 {offsets = [0, 0], sizes = [128, 1], strides = [1, 1]} : vector<128x3xf32> to vector<128x1xf32>
    %4 = vector.extract_strided_slice %0 {offsets = [0, 0], sizes = [1, 128], strides = [1, 1]} : vector<3x128xf32> to vector<1x128xf32>
    %5 = vector.broadcast %3 : vector<128x1xf32> to vector<128x128xf32>
    %6 = vector.broadcast %4 : vector<1x128xf32> to vector<128x128xf32>
    %7 = arith.mulf %5, %6 : vector<128x128xf32>
    %8 = vector.broadcast %2 : vector<128x1xf32> to vector<128x128xf32>
    %9 = arith.addf %8, %7 : vector<128x128xf32>
    %10 = vector.extract_strided_slice %1 {offsets = [0, 1], sizes = [128, 1], strides = [1, 1]} : vector<128x3xf32> to vector<128x1xf32>
    %11 = vector.extract_strided_slice %0 {offsets = [1, 0], sizes = [1, 128], strides = [1, 1]} : vector<3x128xf32> to vector<1x128xf32>
    %12 = vector.broadcast %10 : vector<128x1xf32> to vector<128x128xf32>
    %13 = vector.broadcast %11 : vector<1x128xf32> to vector<128x128xf32>
    %14 = arith.mulf %12, %13 : vector<128x128xf32>
    %15 = arith.addf %9, %14 : vector<128x128xf32>
    %16 = vector.extract_strided_slice %1 {offsets = [0, 2], sizes = [128, 1], strides = [1, 1]} : vector<128x3xf32> to vector<128x1xf32>
    %17 = vector.extract_strided_slice %0 {offsets = [2, 0], sizes = [1, 128], strides = [1, 1]} : vector<3x128xf32> to vector<1x128xf32>
    %18 = vector.broadcast %16 : vector<128x1xf32> to vector<128x128xf32>
    %19 = vector.broadcast %17 : vector<1x128xf32> to vector<128x128xf32>
    %20 = arith.mulf %18, %19 : vector<128x128xf32>
    %21 = arith.addf %15, %20 : vector<128x128xf32>
    %cst = arith.constant 0.000000e+00 : f32
    %22 = vector.broadcast %cst : f32 to vector<128x128xf32>
    %23 = arith.maximumf %21, %22 : vector<128x128xf32>
    %c0_5 = arith.constant 0 : index
    %c0_6 = arith.constant 0 : index
    %24 = vector.load %arg4[%c0_5, %c0_6] : memref<128x1xf32, #tpu.memory_space<vmem>>, vector<128x1xf32>
    %25 = vector.broadcast %24 : vector<128x1xf32> to vector<128x128xf32>
    %26 = arith.mulf %23, %25 : vector<128x128xf32>
    %cst_7 = arith.constant dense<0.000000e+00> : vector<128xf32>
    %27 = vector.multi_reduction <add>, %26, %cst_7 [0] : vector<128x128xf32> to vector<128xf32>
    %28 = vector.shape_cast %27 : vector<128xf32> to vector<1x128xf32>
    %c0_8 = arith.constant 0 : index
    %29 = memref.load %arg5[%c0_8] : memref<3xf32, #tpu.memory_space<smem>>
    %30 = vector.broadcast %29 : f32 to vector<1x128xf32>
    %31 = arith.addf %28, %30 : vector<1x128xf32>
    %32 = math.tanh %31 : vector<1x128xf32>
    %c1 = arith.constant 1 : index
    %33 = memref.load %arg5[%c1] : memref<3xf32, #tpu.memory_space<smem>>
    %34 = vector.broadcast %33 : f32 to vector<1x128xf32>
    %35 = arith.mulf %32, %34 : vector<1x128xf32>
    %c2 = arith.constant 2 : index
    %36 = memref.load %arg5[%c2] : memref<3xf32, #tpu.memory_space<smem>>
    %37 = vector.broadcast %36 : f32 to vector<1x128xf32>
    %38 = arith.addf %35, %37 : vector<1x128xf32>
    %c0_9 = arith.constant 0 : index
    %c0_10 = arith.constant 0 : index
    %39 = vector.load %arg6[%c0_9, %c0_10] : memref<1x128xf32, #tpu.memory_space<vmem>>, vector<1x128xf32>
    tpu.vector_store %arg6[%c0_9, %c0_10], %38 {strides = array<i32>} : memref<1x128xf32, #tpu.memory_space<vmem>>, vector<1x128xf32>,
    return
  }
  func.func @transform_0(%arg0: i32) -> (i32, i32) {
    %c0_i32 = arith.constant 0 : i32
    %c0_i32_0 = arith.constant 0 : i32
    return %c0_i32, %arg0 : i32, i32
  }
  func.func @transform_1(%arg0: i32) -> (i32, i32) {
    %c0_i32 = arith.constant 0 : i32
    %c0_i32_0 = arith.constant 0 : i32
    %c0_i32_1 = arith.constant 0 : i32
    return %c0_i32, %c0_i32_0 : i32, i32
  }
  func.func @transform_2(%arg0: i32) -> (i32, i32) {
    %c0_i32 = arith.constant 0 : i32
    %c0_i32_0 = arith.constant 0 : i32
    %c0_i32_1 = arith.constant 0 : i32
    return %c0_i32, %c0_i32_0 : i32, i32
  }
  func.func @transform_3(%arg0: i32) -> (i32, i32) {
    %c0_i32 = arith.constant 0 : i32
    %c0_i32_0 = arith.constant 0 : i32
    %c0_i32_1 = arith.constant 0 : i32
    return %c0_i32, %c0_i32_0 : i32, i32
  }
  func.func @transform_4(%arg0: i32) -> i32 {
    %c0_i32 = arith.constant 0 : i32
    %c0_i32_0 = arith.constant 0 : i32
    return %c0_i32 : i32
  }
  func.func @transform_5(%arg0: i32) -> (i32, i32) {
    %c0_i32 = arith.constant 0 : i32
    %c0_i32_0 = arith.constant 0 : i32
    return %c0_i32, %arg0 : i32, i32
  }
}

</mosaic_0001>

<bundles_post_ra>
// kernel: tpu_custom_call.1
= control target key start
LH: loop header
LB: loop body
LE: loop exit
PB: predicated region body
PF: predicated region fallthrough
CT: control target
= control target key end

     0   :  { %10 = vsyncpa [#allocation4], 0  ;;  %s1050_s0 = inlined_call_operand.vmem [shape: f32[3,128], index: 0, kind: input, shape index: {}]   ;;  %s1051_s1 = inlined_call_operand.vmem [shape: f32[128,3], index: 1, kind: input, shape index: {}]   ;;  %s1052_s2 = inlined_call_operand.vmem [shape: f32[128,1], index: 2, kind: input, shape index: {}]   ;;  %s1053_s3 = inlined_call_operand.vmem [shape: f32[128,1], index: 3, kind: input, shape index: {}]   ;;  %s1054_s4 = inlined_call_operand.vmem [shape: f32[3], index: 4, kind: input, shape index: {}]   ;;  %s1055_s5 = inlined_call_operand.hbm [shape: f32[1,128], index: 5, kind: output, shape index: {}]  }
   0x1   :  { %11 = vsyncpa [#allocation3], 0  ;;  %s26_s20 = sshll.u32 %s1054_s4, 4  ;;  %s27_s20 = int_to_ptr.vmem [resolvable:$true] %s26_s20 }
   0x2   :  { %s659_s21 = scalar_lea.vmem %s27_s20, 16  ;;  %p664_p1 = scmp.lt.s32.totalorder %s27_s20, %s27_s20 }
   0x3   :  { %p660_p0 = scmp.ne.s32.totalorder %s27_s20, %s659_s21  ;;  %p665_p2 = scmp.lt.s32.totalorder %s659_s21, %s659_s21 }
   0x5   :  { %p666_p3 = por %p665_p2, %p664_p1 }
   0x7   :  { %p667_p4 = pnand %p666_p3, %p660_p0 }
   0x9   :  { %670 = shalt.err (!%p667_p4)
}
   0xa   :  { %s697_s22 = smov [#allocation2]  }
   0xb   :  { %29 = dma.vmem_to_smem %s27_s20, 16, %s697_s22, [#allocation4]  }
   0xc   :  { %693 = dma.done.wait [#allocation4], 16  }
   0xd   :  { %694 = vsyncadd [#allocation4], 4294967280 }
   0xe   :  { %33 = sfence }
   0xf   :  { %v738_v0 = vld [vmem:[%s1051_s1 + $0x10] sm:$0xff]  ;;  %v35_v1 = vld [vmem:[%s1051_s1] sm:$0xff]  ;;  %v698_v2 = vmov 1   ;;  %v699_v3 = vmov 0   ;;  %v38_v4 = vld [vmem:[%s1051_s1 + $0x18] sm:$0xff]  ;;  %v700_v11 = vmov 2   ;;  %v147_v60 = vlaneseq }
  0x10   :  { %646 = vset.pattern.permute.xlu0 %v698_v2  ;;  %645 = vset.pattern.permute.xlu1 %v699_v3  ;;  %v752_v5 = vld [vmem:[%s1051_s1 + $0x28] sm:$0xff]  ;;  %v759_v6 = vld [vmem:[%s1051_s1 + $0x38] sm:$0xff]  ;;  %v49_v14 = vld [vmem:[%s1051_s1 + $0x70] sm:$0xff]  ;;  %s638_s13 = sld [smem:[#allocation2 + $0x1]]  ;;  %s701_s14 = smov [#allocation5]  }
  0x11   :  { %79 = vperm.xlu1 %645, %v738_v0   ;;  %264 = vperm.xlu0 %646, %v35_v1   ;;  %v766_v7 = vld [vmem:[%s1051_s1 + $0x48] sm:$0xff]  ;;  %v773_v8 = vld [vmem:[%s1051_s1 + $0x58] sm:$0xff]  ;;  %v39_v19 = vld [vmem:[%s1051_s1 + $0x20] sm:$0xff]  ;;  %v148_v62 = vshrl.u32 %v147_v60, 7  ;;  %s629_s15 = sshll.u32 %s701_s14, 4  ;;  %s630_s15 = int_to_ptr.vmem [resolvable:$true] %s629_s15 }
  0x12   :  { %v780_v9 = vld [vmem:[%s1051_s1 + $0x68] sm:$0xff]  ;;  %v787_v10 = vld [vmem:[%s1051_s1 + $0x78] sm:$0xff]  ;;  %v41_v21 = vld [vmem:[%s1051_s1 + $0x30] sm:$0xff]  ;;  %s671_s16 = scalar_lea.vmem %s630_s15, 16  ;;  %s675_s17 = scalar_lea.vmem %s630_s15, 32 }
  0x13   :  { %v52_v12 = vld [vmem:[%s1052_s2 + $0x8] sm:$0xff]  ;;  %v54_v13 = vld [vmem:[%s1052_s2 + $0x18] sm:$0xff]  ;;  %v43_v23 = vld [vmem:[%s1051_s1 + $0x40] sm:$0xff]  ;;  %p672_p5 = scmp.ne.s32.totalorder %s630_s15, %s671_s16  ;;  %p676_p6 = scmp.lt.s32.totalorder %s630_s15, %s630_s15 }
  0x14   :  { %v56_v15 = vld [vmem:[%s1052_s2 + $0x28] sm:$0xff]  ;;  %v58_v16 = vld [vmem:[%s1052_s2 + $0x38] sm:$0xff]  ;;  %v834_v25 = vld [vmem:[%s1051_s1 + $0x50] sm:$0xff]  ;;  %p677_p7 = scmp.lt.s32.totalorder %s675_s17, %s671_s16 }
  0x15   :  { %84 = vperm.xlu1 %645, %v38_v4   ;;  %276 = vperm.xlu0 %646, %v38_v4   ;;  %v36_v17 = vld [vmem:[%s1051_s1 + $0x8] sm:$0xff]  ;;  %v62_v20 = vld [vmem:[%s1052_s2 + $0x58] sm:$0xff]  ;;  %v840_v26 = vld [vmem:[%s1051_s1 + $0x60] sm:$0xff] }
  0x16   :  { %v60_v18 = vld [vmem:[%s1052_s2 + $0x48] sm:$0xff]  ;;  %v66_v24 = vld [vmem:[%s1052_s2 + $0x78] sm:$0xff]  ;;  %v51_v27 = vld [vmem:[%s1052_s2] sm:$0xff]  ;;  %p678_p8 = por %p677_p7, %p676_p6 }
  0x17   :  { %v64_v22 = vld [vmem:[%s1052_s2 + $0x68] sm:$0xff]  ;;  %v53_v28 = vld [vmem:[%s1052_s2 + $0x10] sm:$0xff]  ;;  %v55_v29 = vld [vmem:[%s1052_s2 + $0x20] sm:$0xff] }
  0x18   :  { %v57_v30 = vld [vmem:[%s1052_s2 + $0x30] sm:$0xff]  ;;  %v59_v31 = vld [vmem:[%s1052_s2 + $0x40] sm:$0xff]  ;;  %v480_v37 = vld [vmem:[%s1053_s3 + $0x8] sm:$0xff]  ;;  %p679_p9 = pnand %p678_p8, %p672_p5 }
  0x19   :  { %94 = vperm.xlu1 %645, %v752_v5   ;;  %284 = vperm.xlu0 %646, %v752_v5   ;;  %v61_v32 = vld [vmem:[%s1052_s2 + $0x50] sm:$0xff]  ;;  %v63_v33 = vld [vmem:[%s1052_s2 + $0x60] sm:$0xff]  ;;  %v482_v38 = vld [vmem:[%s1053_s3 + $0x18] sm:$0xff] }
  0x1a   :  { %v65_v34 = vld [vmem:[%s1052_s2 + $0x70] sm:$0xff]  ;;  %v479_v35 = vld [vmem:[%s1053_s3] sm:$0xff]  ;;  %v484_v40 = vld [vmem:[%s1053_s3 + $0x28] sm:$0xff]  ;;  %s639_s2 = sld [smem:[#allocation2 + $0x2]] }
  0x1b   :  { %v481_v36 = vld [vmem:[%s1053_s3 + $0x10] sm:$0xff]  ;;  %v483_v39 = vld [vmem:[%s1053_s3 + $0x20] sm:$0xff]  ;;  %v486_v44 = vld [vmem:[%s1053_s3 + $0x38] sm:$0xff] }
  0x1c   :  { %v485_v41 = vld [vmem:[%s1053_s3 + $0x30] sm:$0xff]  ;;  %v487_v47 = vld [vmem:[%s1053_s3 + $0x40] sm:$0xff]  ;;  %v488_v50 = vld [vmem:[%s1053_s3 + $0x48] sm:$0xff] }
  0x1d   :  { %104 = vperm.xlu1 %645, %v759_v6   ;;  %292 = vperm.xlu0 %646, %v759_v6   ;;  %v489_v53 = vld [vmem:[%s1053_s3 + $0x50] sm:$0xff]  ;;  %v491_v56 = vld [vmem:[%s1053_s3 + $0x60] sm:$0xff]  ;;  %v494_v59 = vld [vmem:[%s1053_s3 + $0x78] sm:$0xff] }
  0x21   :  { %114 = vperm.xlu1 %645, %v766_v7   ;;  %300 = vperm.xlu0 %646, %v766_v7  }
  0x25   :  { %124 = vperm.xlu1 %645, %v773_v8   ;;  %308 = vperm.xlu0 %646, %v773_v8  }
  0x29   :  { %134 = vperm.xlu1 %645, %v780_v9   ;;  %316 = vperm.xlu0 %646, %v780_v9  }
  0x2d   :  { %144 = vperm.xlu1 %645, %v787_v10   ;;  %648 = vset.pattern.permute.xlu0 %v700_v11 }
  0x2e   :  { %364 = vperm.xlu0 %648, %v35_v1  }
  0x31   :  { %174 = vperm.xlu1 %645, %v52_v12  }
  0x32   :  { %376 = vperm.xlu0 %648, %v38_v4   ;;  %v149_v4 = vsub.s32 0, %v148_v62 }
  0x35   :  { %184 = vperm.xlu1 %645, %v54_v13  }
  0x36   :  { %420 = vperm.xlu0 %648, %v49_v14  }
  0x39   :  { %194 = vperm.xlu1 %645, %v56_v15  }
  0x3a   :  { %653 = vset.pattern.permute.xlu0 %v699_v3 }
  0x3b   :  { %69 = vperm.xlu0 %653, %v35_v1   ;;  %v490_v1 = vld [vmem:[%s1053_s3 + $0x58] sm:$0xff] }
  0x3d   :  { %204 = vperm.xlu1 %645, %v58_v16  }
  0x3f   :  { %74 = vperm.xlu0 %653, %v36_v17  }
  0x41   :  { %214 = vperm.xlu1 %645, %v60_v18  }
  0x43   :  { %89 = vperm.xlu0 %653, %v39_v19  }
  0x45   :  { %224 = vperm.xlu1 %645, %v62_v20  }
  0x47   :  { %99 = vperm.xlu0 %653, %v41_v21  }
  0x49   :  { %234 = vperm.xlu1 %645, %v64_v22  }
  0x4b   :  { %109 = vperm.xlu0 %653, %v43_v23  }
  0x4d   :  { %244 = vperm.xlu1 %645, %v66_v24  }
  0x4f   :  { %119 = vperm.xlu0 %653, %v834_v25  }
  0x51   :  { %647 = vset.pattern.permute.xlu1 %v698_v2 }
  0x52   :  { %268 = vperm.xlu1 %647, %v36_v17  }
  0x53   :  { %129 = vperm.xlu0 %653, %v840_v26  }
  0x56   :  { %272 = vperm.xlu1 %647, %v738_v0  }
  0x57   :  { %139 = vperm.xlu0 %653, %v49_v14  }
  0x5a   :  { %280 = vperm.xlu1 %647, %v39_v19  }
  0x5b   :  { %169 = vperm.xlu0 %653, %v51_v27   ;;  %v493_v27 = vld [vmem:[%s1053_s3 + $0x70] sm:$0xff] }
  0x5e   :  { %288 = vperm.xlu1 %647, %v41_v21  }
  0x5f   :  { %179 = vperm.xlu0 %653, %v53_v28  }
  0x62   :  { %296 = vperm.xlu1 %647, %v43_v23  }
  0x63   :  { %189 = vperm.xlu0 %653, %v55_v29  }
  0x66   :  { %304 = vperm.xlu1 %647, %v834_v25  }
  0x67   :  { %199 = vperm.xlu0 %653, %v57_v30  }
  0x6a   :  { %312 = vperm.xlu1 %647, %v840_v26  }
  0x6b   :  { %209 = vperm.xlu0 %653, %v59_v31  }
  0x6e   :  { %320 = vperm.xlu1 %647, %v49_v14  }
  0x6f   :  { %219 = vperm.xlu0 %653, %v61_v32  }
  0x72   :  { %649 = vset.pattern.permute.xlu1 %v700_v11 }
  0x73   :  { %368 = vperm.xlu1 %649, %v36_v17   ;;  %229 = vperm.xlu0 %653, %v63_v33  }
  0x77   :  { %372 = vperm.xlu1 %649, %v738_v0   ;;  %239 = vperm.xlu0 %653, %v65_v34  }
  0x7b   :  { %380 = vperm.xlu1 %649, %v39_v19   ;;  %497 = vperm.xlu0 %653, %v479_v35  }
  0x7f   :  { %650 = vset.pattern.permute.xlu1 %v699_v3  ;;  %507 = vperm.xlu0 %653, %v481_v36  }
  0x80   :  { %502 = vperm.xlu1 %650, %v480_v37  }
  0x83   :  { %512 = vperm.xlu0 %653, %v482_v38  }
  0x84   :  { %651 = vset.pattern.permute.xlu1 %v700_v11 }
  0x85   :  { %384 = vperm.xlu1 %651, %v752_v5   ;;  %v329_v5 = vsub.s32 1, %v148_v62 }
  0x87   :  { %517 = vperm.xlu0 %653, %v483_v39  }
  0x89   :  { %388 = vperm.xlu1 %651, %v41_v21   ;;  %v492_v21 = vld [vmem:[%s1053_s3 + $0x68] sm:$0xff]  ;;  %s612_s3 = sld [smem:[#allocation2]] }
  0x8b   :  { %522 = vperm.xlu0 %653, %v484_v40  }
  0x8d   :  { %392 = vperm.xlu1 %651, %v759_v6   ;;  %v429_v6 = vsub.s32 2, %v148_v62 }
  0x8f   :  { %527 = vperm.xlu0 %653, %v485_v41  }
  0x90   :  { %v898_v42 = vpop.permute.xlu1 %79  ;;  %v900_v43 = vpop.permute.xlu0 %264 }
  0x91   :  { %396 = vperm.xlu1 %651, %v43_v23  }
  0x93   :  { %532 = vperm.xlu0 %653, %v486_v44  }
  0x94   :  { %v85_v45 = vpop.permute.xlu1 %84  ;;  %v277_v46 = vpop.permute.xlu0 %276 }
  0x95   :  { %400 = vperm.xlu1 %651, %v766_v7  }
  0x97   :  { %537 = vperm.xlu0 %653, %v487_v47  }
  0x98   :  { %v95_v48 = vpop.permute.xlu1 %94  ;;  %v285_v49 = vpop.permute.xlu0 %284 }
  0x99   :  { %404 = vperm.xlu1 %651, %v834_v25  }
  0x9b   :  { %542 = vperm.xlu0 %653, %v488_v50  }
  0x9c   :  { %v105_v51 = vpop.permute.xlu1 %104  ;;  %v293_v52 = vpop.permute.xlu0 %292 }
  0x9d   :  { %408 = vperm.xlu1 %651, %v773_v8   ;;  %v34_v8 = vld [vmem:[%s1050_s0] sm:$0x7] }
  0x9e   :  { %v938_v12 = vrot.slane %v34_v8, %v329_v5  ;;  %v940_v13 = vrot.slane %v34_v8, %v429_v6 }
  0x9f   :  { %547 = vperm.xlu0 %653, %v489_v53  }
  0xa0   :  { %v115_v54 = vpop.permute.xlu1 %114  ;;  %v301_v55 = vpop.permute.xlu0 %300  ;;  %v334_v17 = vmul.f32 %v938_v12, %v277_v46  ;;  %v338_v31 = vmul.f32 %v938_v12, %v293_v52 }
  0xa1   :  { %412 = vperm.xlu1 %651, %v840_v26   ;;  %v340_v37 = vmul.f32 %v938_v12, %v301_v55 }
  0xa3   :  { %557 = vperm.xlu0 %653, %v491_v56  }
  0xa4   :  { %v125_v57 = vpop.permute.xlu1 %124  ;;  %v309_v58 = vpop.permute.xlu0 %308 }
  0xa5   :  { %416 = vperm.xlu1 %651, %v780_v9   ;;  %v936_v9 = vrot.slane %v34_v8, %v149_v4  ;;  %v342_v46 = vmul.f32 %v938_v12, %v309_v58 }
  0xa7   :  { %572 = vperm.xlu0 %653, %v494_v59   ;;  %v154_v15 = vmul.f32 %v936_v9, %v85_v45  ;;  %v156_v22 = vmul.f32 %v936_v9, %v95_v48  ;;  %v158_v28 = vmul.f32 %v936_v9, %v105_v51  ;;  %v160_v33 = vmul.f32 %v936_v9, %v115_v54 }
  0xa8   :  { %v135_v61 = vpop.permute.xlu1 %134  ;;  %v317_v63 = vpop.permute.xlu0 %316  ;;  %v162_v41 = vmul.f32 %v936_v9, %v125_v57 }
  0xa9   :  { %652 = vset.pattern.permute.xlu1 %v698_v2  ;;  %v344_v52 = vmul.f32 %v938_v12, %v317_v63 }
  0xaa   :  { %324 = vperm.xlu1 %652, %v787_v10  }
  0xac   :  { %v145_v0 = vpop.permute.xlu1 %144 }
  0xad   :  { %v930_v7 = vpop.permute.xlu0 %364  ;;  %v166_v55 = vmul.f32 %v936_v9, %v145_v0  ;;  %v331_v0 = vmul.f32 %v938_v12, %v900_v43 }
  0xae   :  { %654 = vset.pattern.permute.xlu1 %v699_v3 }
  0xaf   :  { %552 = vperm.xlu1 %654, %v490_v1  }
  0xb0   :  { %v175_v2 = vpop.permute.xlu1 %174 }
  0xb1   :  { %v377_v14 = vpop.permute.xlu0 %376 }
  0xb2   :  { %v434_v18 = vmul.f32 %v940_v13, %v377_v14  ;;  %v153_v14 = vmul.f32 %v936_v9, %v898_v42 }
  0xb3   :  { %655 = vset.pattern.permute.xlu1 %v700_v11  ;;  %v336_v11 = vmul.f32 %v938_v12, %v285_v49  ;;  %v164_v49 = vmul.f32 %v936_v9, %v135_v61 }
  0xb4   :  { %v185_v16 = vpop.permute.xlu1 %184  ;;  %424 = vperm.xlu1 %655, %v787_v10  }
  0xb5   :  { %v250_v19 = vadd.f32 %v185_v16, %v154_v15  ;;  %v947_v20 = vpop.permute.xlu0 %420  ;;  %v431_v15 = vmul.f32 %v940_v13, %v930_v7 }
  0xb7   :  { %v350_v23 = vadd.f32 %v334_v17, %v250_v19 }
  0xb8   :  { %v195_v24 = vpop.permute.xlu1 %194  ;;  %656 = vset.pattern.permute.xlu1 %v699_v3 }
  0xb9   :  { %v252_v10 = vadd.f32 %v195_v24, %v156_v22  ;;  %562 = vperm.xlu1 %656, %v492_v21   ;;  %v955_v25 = vadd.f32 %v434_v18, %v350_v23 }
  0xba   :  { %v70_v26 = vpop.permute.xlu0 %69 }
  0xbb   :  { %v961_v29 = vadd.f32 %v336_v11, %v252_v10  ;;  %v151_v6 = vmul.f32 %v936_v9, %v70_v26 }
  0xbc   :  { %v205_v30 = vpop.permute.xlu1 %204 }
  0xbd   :  { %v254_v32 = vadd.f32 %v205_v30, %v158_v28  ;;  %567 = vperm.xlu1 %656, %v493_v27  }
  0xbe   :  { %v75_v3 = vpop.permute.xlu0 %74 }
  0xbf   :  { %v965_v34 = vadd.f32 %v338_v31, %v254_v32  ;;  %v152_v35 = vmul.f32 %v936_v9, %v75_v3 }
  0xc0   :  { %v215_v36 = vpop.permute.xlu1 %214 }
  0xc1   :  { %v248_v38 = vadd.f32 %v175_v2, %v152_v35  ;;  %v256_v39 = vadd.f32 %v215_v36, %v160_v33 }
  0xc2   :  { %v90_v40 = vpop.permute.xlu0 %89 }
  0xc3   :  { %v970_v44 = vadd.f32 %v340_v37, %v256_v39  ;;  %v155_v23 = vmul.f32 %v936_v9, %v90_v40 }
  0xc4   :  { %v225_v45 = vpop.permute.xlu1 %224 }
  0xc5   :  { %v258_v47 = vadd.f32 %v225_v45, %v162_v41 }
  0xc6   :  { %v100_v48 = vpop.permute.xlu0 %99 }
  0xc7   :  { %v974_v50 = vadd.f32 %v342_v46, %v258_v47  ;;  %v157_v42 = vmul.f32 %v936_v9, %v100_v48 }
  0xc8   :  { %v235_v51 = vpop.permute.xlu1 %234 }
  0xc9   :  { %v260_v53 = vadd.f32 %v235_v51, %v164_v49 }
  0xca   :  { %v110_v54 = vpop.permute.xlu0 %109 }
  0xcb   :  { %v978_v56 = vadd.f32 %v344_v52, %v260_v53  ;;  %v159_v32 = vmul.f32 %v936_v9, %v110_v54 }
  0xcc   :  { %v245_v57 = vpop.permute.xlu1 %244 }
  0xcd   :  { %v980_v59 = vadd.f32 %v245_v57, %v166_v55 }
  0xce   :  { %v120_v60 = vpop.permute.xlu0 %119 }
  0xd1   :  { %v269_v58 = vpop.permute.xlu1 %268 }
  0xd2   :  { %v332_v62 = vmul.f32 %v938_v12, %v269_v58  ;;  %v130_v1 = vpop.permute.xlu0 %129 }
  0xd3   :  { %v163_v47 = vmul.f32 %v936_v9, %v130_v1 }
  0xd4   :  { %v348_v61 = vadd.f32 %v332_v62, %v248_v38  ;;  %v161_v38 = vmul.f32 %v936_v9, %v120_v60 }
  0xd5   :  { %v273_v4 = vpop.permute.xlu1 %272 }
  0xd6   :  { %v140_v5 = vpop.permute.xlu0 %139  ;;  %v333_v19 = vmul.f32 %v938_v12, %v273_v4 }
  0xd7   :  { %v165_v54 = vmul.f32 %v936_v9, %v140_v5 }
  0xd9   :  { %v281_v63 = vpop.permute.xlu1 %280 }
  0xda   :  { %v170_v8 = vpop.permute.xlu0 %169  ;;  %v335_v43 = vmul.f32 %v938_v12, %v281_v63 }
  0xdb   :  { %v247_v2 = vadd.f32 %v170_v8, %v151_v6  ;;  %v445_v6 = vmul.f32 %v940_v13, %v947_v20 }
  0xdd   :  { %v347_v16 = vadd.f32 %v331_v0, %v247_v2  ;;  %v289_v17 = vpop.permute.xlu1 %288 }
  0xde   :  { %v180_v18 = vpop.permute.xlu0 %179  ;;  %v337_v30 = vmul.f32 %v938_v12, %v289_v17 }
  0xdf   :  { %v249_v21 = vadd.f32 %v180_v18, %v153_v14  ;;  %v447_v22 = vadd.f32 %v431_v15, %v347_v16 }
  0xe1   :  { %v349_v24 = vadd.f32 %v333_v19, %v249_v21  ;;  %v297_v11 = vpop.permute.xlu1 %296  ;;  %v463_v15 = vmax.f32 %v447_v22, 0.0 }
  0xe2   :  { %v190_v10 = vpop.permute.xlu0 %189  ;;  %v339_v36 = vmul.f32 %v938_v12, %v297_v11 }
  0xe3   :  { %v251_v26 = vadd.f32 %v190_v10, %v155_v23  ;;  %v466_v10 = vmax.f32 %v955_v25, 0.0 }
  0xe5   :  { %v351_v27 = vadd.f32 %v335_v43, %v251_v26  ;;  %v305_v28 = vpop.permute.xlu1 %304 }
  0xe6   :  { %v200_v7 = vpop.permute.xlu0 %199  ;;  %v341_v45 = vmul.f32 %v938_v12, %v305_v28 }
  0xe7   :  { %v253_v31 = vadd.f32 %v200_v7, %v157_v42 }
  0xe9   :  { %v353_v3 = vadd.f32 %v337_v30, %v253_v31  ;;  %v313_v33 = vpop.permute.xlu1 %312 }
  0xea   :  { %v210_v35 = vpop.permute.xlu0 %209  ;;  %v343_v52 = vmul.f32 %v938_v12, %v313_v33 }
  0xeb   :  { %v255_v37 = vadd.f32 %v210_v35, %v159_v32 }
  0xed   :  { %v998_v39 = vadd.f32 %v339_v36, %v255_v37  ;;  %v321_v40 = vpop.permute.xlu1 %320 }
  0xee   :  { %v220_v41 = vpop.permute.xlu0 %219  ;;  %v345_v62 = vmul.f32 %v938_v12, %v321_v40 }
  0xef   :  { %v257_v46 = vadd.f32 %v220_v41, %v161_v38 }
  0xf1   :  { %v1002_v48 = vadd.f32 %v341_v45, %v257_v46 }
  0xf2   :  { %v369_v49 = vpop.permute.xlu1 %368  ;;  %v230_v51 = vpop.permute.xlu0 %229 }
  0xf3   :  { %v259_v53 = vadd.f32 %v230_v51, %v163_v47  ;;  %v432_v57 = vmul.f32 %v940_v13, %v369_v49 }
  0xf5   :  { %v1006_v55 = vadd.f32 %v343_v52, %v259_v53  ;;  %v448_v8 = vadd.f32 %v432_v57, %v348_v61 }
  0xf6   :  { %v373_v60 = vpop.permute.xlu1 %372  ;;  %v240_v58 = vpop.permute.xlu0 %239 }
  0xf7   :  { %v261_v4 = vadd.f32 %v240_v58, %v165_v54  ;;  %v433_v1 = vmul.f32 %v940_v13, %v373_v60  ;;  %v464_v17 = vmax.f32 %v448_v8, 0.0 }
  0xf9   :  { %v361_v63 = vadd.f32 %v345_v62, %v261_v4  ;;  %v449_v9 = vadd.f32 %v433_v1, %v349_v24 }
  0xfa   :  { %v381_v0 = vpop.permute.xlu1 %380  ;;  %v498_v2 = vpop.permute.xlu0 %497 }
  0xfb   :  { %v1013_v14 = vadd.f32 %v445_v6, %v361_v63  ;;  %v435_v5 = vmul.f32 %v940_v13, %v381_v0  ;;  %v575_v19 = vmul.f32 %v498_v2, %v463_v15  ;;  %v465_v21 = vmax.f32 %v449_v9, 0.0 }
  0xfd   :  { %v451_v11 = vadd.f32 %v435_v5, %v351_v27 }
  0xfe   :  { %v508_v16 = vpop.permute.xlu0 %507 }
  0xff   :  { %v503_v18 = vpop.permute.xlu1 %502  ;;  %v577_v20 = vmul.f32 %v508_v16, %v465_v21  ;;  %v467_v7 = vmax.f32 %v451_v11, 0.0 }
 0x100   :  { %v576_v23 = vmul.f32 %v503_v18, %v464_v17 }
 0x102   :  { %v591_v43 = vadd.f32 %v576_v23, %v575_v19  ;;  %v513_v61 = vpop.permute.xlu0 %512 }
 0x103   :  { %v578_v26 = vmul.f32 %v513_v61, %v466_v10 }
 0x104   :  { %v592_v42 = vadd.f32 %v591_v43, %v577_v20  ;;  %v385_v28 = vpop.permute.xlu1 %384 }
 0x105   :  { %v436_v24 = vmul.f32 %v940_v13, %v385_v28 }
 0x106   :  { %v593_v30 = vadd.f32 %v592_v42, %v578_v26  ;;  %v518_v22 = vpop.permute.xlu0 %517 }
 0x107   :  { %v452_v31 = vadd.f32 %v436_v24, %v961_v29  ;;  %v579_v32 = vmul.f32 %v518_v22, %v467_v7 }
 0x108   :  { %v389_v33 = vpop.permute.xlu1 %388 }
 0x109   :  { %v594_v35 = vadd.f32 %v593_v30, %v579_v32  ;;  %v437_v27 = vmul.f32 %v940_v13, %v389_v33  ;;  %v468_v36 = vmax.f32 %v452_v31, 0.0 }
 0x10a   :  { %v523_v25 = vpop.permute.xlu0 %522 }
 0x10b   :  { %v453_v37 = vadd.f32 %v437_v27, %v353_v3  ;;  %v580_v38 = vmul.f32 %v523_v25, %v468_v36 }
 0x10c   :  { %v393_v40 = vpop.permute.xlu1 %392 }
 0x10d   :  { %v595_v41 = vadd.f32 %v594_v35, %v580_v38  ;;  %v438_v45 = vmul.f32 %v940_v13, %v393_v40  ;;  %v469_v46 = vmax.f32 %v453_v37, 0.0 }
 0x10e   :  { %v528_v47 = vpop.permute.xlu0 %527 }
 0x10f   :  { %v454_v49 = vadd.f32 %v438_v45, %v965_v34  ;;  %v581_v51 = vmul.f32 %v528_v47, %v469_v46  ;;  %v477_v45 = vmax.f32 %v1013_v14, 0.0 }
 0x110   :  { %v397_v52 = vpop.permute.xlu1 %396 }
 0x111   :  { %v596_v29 = vadd.f32 %v595_v41, %v581_v51  ;;  %v439_v53 = vmul.f32 %v940_v13, %v397_v52  ;;  %v470_v54 = vmax.f32 %v454_v49, 0.0 }
 0x112   :  { %v533_v57 = vpop.permute.xlu0 %532 }
 0x113   :  { %v455_v60 = vadd.f32 %v439_v53, %v998_v39  ;;  %v582_v58 = vmul.f32 %v533_v57, %v470_v54  ;;  %v613_v54 = vstv %s612_s3 }
 0x114   :  { %v401_v3 = vpop.permute.xlu1 %400 }
 0x115   :  { %v597_v62 = vadd.f32 %v596_v29, %v582_v58  ;;  %v440_v4 = vmul.f32 %v940_v13, %v401_v3  ;;  %v471_v1 = vmax.f32 %v455_v60, 0.0  ;;  %v617_v58 = vstv %s638_s13 }
 0x116   :  { %v538_v6 = vpop.permute.xlu0 %537  ;;  %v620_v3 = vstv %s639_s2 }
 0x117   :  { %v456_v63 = vadd.f32 %v440_v4, %v970_v44  ;;  %v583_v8 = vmul.f32 %v538_v6, %v471_v1 }
 0x118   :  { %v405_v34 = vpop.permute.xlu1 %404 }
 0x119   :  { %v598_v0 = vadd.f32 %v597_v62, %v583_v8  ;;  %v441_v2 = vmul.f32 %v940_v13, %v405_v34  ;;  %v472_v9 = vmax.f32 %v456_v63, 0.0 }
 0x11a   :  { %v543_v5 = vpop.permute.xlu0 %542 }
 0x11b   :  { %v457_v15 = vadd.f32 %v441_v2, %v1002_v48  ;;  %v584_v16 = vmul.f32 %v543_v5, %v472_v9 }
 0x11c   :  { %v409_v39 = vpop.permute.xlu1 %408 }
 0x11d   :  { %v599_v17 = vadd.f32 %v598_v0, %v584_v16  ;;  %v473_v18 = vmax.f32 %v457_v15, 0.0  ;;  %v442_v44 = vmul.f32 %v940_v13, %v409_v39 }
 0x11e   :  { %v548_v19 = vpop.permute.xlu0 %547 }
 0x11f   :  { %v585_v21 = vmul.f32 %v548_v19, %v473_v18  ;;  %v458_v43 = vadd.f32 %v442_v44, %v974_v50 }
 0x120   :  { %v413_v23 = vpop.permute.xlu1 %412 }
 0x121   :  { %v600_v11 = vadd.f32 %v599_v17, %v585_v21  ;;  %v443_v20 = vmul.f32 %v940_v13, %v413_v23  ;;  %v474_v48 = vmax.f32 %v458_v43, 0.0 }
 0x122   :  { %v558_v30 = vpop.permute.xlu0 %557 }
 0x123   :  { %v459_v61 = vadd.f32 %v443_v20, %v1006_v55 }
 0x124   :  { %v417_v10 = vpop.permute.xlu1 %416 }
 0x125   :  { %v475_v42 = vmax.f32 %v459_v61, 0.0  ;;  %v444_v24 = vmul.f32 %v940_v13, %v417_v10 }
 0x127   :  { %v587_v22 = vmul.f32 %v558_v30, %v475_v42  ;;  %v460_v33 = vadd.f32 %v444_v24, %v978_v56 }
 0x129   :  { %v325_v26 = vpop.permute.xlu1 %324  ;;  %v476_v25 = vmax.f32 %v460_v33, 0.0 }
 0x12a   :  { %v346_v31 = vmul.f32 %v938_v12, %v325_v26  ;;  %v573_v12 = vpop.permute.xlu0 %572 }
 0x12c   :  { %v362_v55 = vadd.f32 %v346_v31, %v980_v59 }
 0x12e   :  { %v553_v28 = vpop.permute.xlu1 %552 }
 0x12f   :  { %v586_v7 = vmul.f32 %v553_v28, %v474_v48 }
 0x131   :  { %v601_v32 = vadd.f32 %v600_v11, %v586_v7 }
 0x133   :  { %v425_v35 = vpop.permute.xlu1 %424  ;;  %v602_v27 = vadd.f32 %v601_v32, %v587_v22 }
 0x134   :  { %v446_v50 = vmul.f32 %v940_v13, %v425_v35 }
 0x136   :  { %v462_v36 = vadd.f32 %v446_v50, %v362_v55 }
 0x138   :  { %v563_v37 = vpop.permute.xlu1 %562  ;;  %v478_v40 = vmax.f32 %v462_v36, 0.0 }
 0x139   :  { %v588_v38 = vmul.f32 %v563_v37, %v476_v25 }
 0x13a   :  { %v590_v49 = vmul.f32 %v573_v12, %v478_v40 }
 0x13b   :  { %v603_v41 = vadd.f32 %v602_v27, %v588_v38 }
 0x13c   :  { %v568_v46 = vpop.permute.xlu1 %567 }
 0x13d   :  { %v589_v47 = vmul.f32 %v568_v46, %v477_v45 }
 0x13f   :  { %v604_v51 = vadd.f32 %v603_v41, %v589_v47 }
 0x141   :  { %v605_v56 = vadd.f32 %v604_v51, %v590_v49 }
 0x143   :  { %v606_v52 = vrot.slane %v605_v56, 4 }
 0x145   :  { %v607_v29 = vadd.f32 %v606_v52, %v605_v56 }
 0x147   :  { %v608_v13 = vrot.slane %v607_v29, 2 }
 0x149   :  { %v609_v53 = vadd.f32 %v608_v13, %v607_v29 }
 0x14b   :  { %v610_v59 = vrot.slane %v609_v53, 1 }
 0x14d   :  { %v611_v57 = vadd.f32 %v610_v59, %v609_v53 }
 0x14f   :  { %v614_v60 = vadd.f32 %v613_v54, %v611_v57 }
 0x151   :  { %657 = vtanh.f32 %v614_v60 }
 0x15b   :  { %v658_v14 = vpop.eup %657 }
 0x15c   :  { %v618_v62 = vmul.f32 %v658_v14, %v617_v58 }
 0x15e   :  { %v621_v4 = vadd.f32 %v620_v3, %v618_v62 }
 0x160   :  { %622 = vst [vmem:[#allocation5] sm:$0x1] %v621_v4 }
 0x161   :  { %682 = shalt.err (!%p679_p9)
}
 0x162   :  { %s683_s20 = scalar_lea.hbm %s1055_s5, 16 }
 0x163   :  { %p684_p10 = scmp.ne.s32.totalorder %s1055_s5, %s683_s20  ;;  %p687_p11 = scmp.lt.u32.totalorder %s683_s20, %s1055_s5 }
 0x165   :  { %p689_p12 = pnand %p687_p11, %p684_p10 }
 0x167   :  { %692 = shalt.err (!%p689_p12)
}
 0x168   :  { %632 = dma.vmem_to_hbm [thread:$0]  %s630_s15, 16, %s1055_s5, [#allocation3]  }
 0x169   :  { %695 = dma.done.wait [#allocation3], 16  }
 0x16a   :  { %696 = vsyncadd [#allocation3], 4294967280 }
 0x16b   :  { %636 = vsyncpa [#allocation3], 1 }
 0x16c   :  { %637 = vsyncpa [#allocation4], 1 }

</bundles_post_ra>
